<compile_context>
chip_gen: v7x
topology: tpu7x:2x2x1
jax: 0.10.0
libtpu: 0.0.40
codegen_flags: <defaults>
</compile_context>

<pallas_src>
import functools

import jax
import jax.numpy as jnp
import numpy as np
from jax.experimental import pallas as pl
from jax.experimental.pallas import tpu as pltpu


def _bam_kernel(x_ref, w_ref, b_ref, out_ref, *, kp, n_real, inv_pool, scale):
    """x_ref/out_ref: (S, C, Np) phase-slab layout for one batch element.
    w_ref: (2*Kp + C, C) fused [Wq_pad; Wk_pad; Wv];  b_ref: (2*Kp + C, 1)."""
    s_blocks = x_ref.shape[0]

    # --- AvgPool2d(ds) == mean over the ds*ds phase slabs (VPU adds only). ---
    xp = x_ref[0]
    for s in range(1, s_blocks):
        xp = xp + x_ref[s]
    xp = xp * inv_pool                                       # (C, Np)

    # --- Fused 1x1 convs: Q, K, V in a single channel matmul + bias. ---
    qkv = jnp.dot(w_ref[...], xp,
                  preferred_element_type=jnp.float32) + b_ref[...]
    q = qkv[:kp] * scale          # fold key_channel**-0.5 into Q (tiny tile)
    k = qkv[kp:2 * kp]            # padded rows are exactly zero
    v = qkv[2 * kp:]              # (C, Np)

    # --- energy[n, m] = sum_c q[c, n] * k[c, m]   (Q^T K). ---
    energy = jax.lax.dot_general(
        q, k, (((0,), (0,)), ((), ())),
        precision=jax.lax.Precision.HIGHEST,
        preferred_element_type=jnp.float32)                  # (Np, Np)

    np_lanes = energy.shape[-1]
    if n_real < np_lanes:  # mask the lane padding out of the softmax
        col = jax.lax.broadcasted_iota(jnp.int32, (np_lanes, np_lanes), 1)
        energy = jnp.where(col < n_real, energy, -1e30)

    # --- Row-wise softmax; approx reciprocal uses the otherwise idle EUP. ---
    m = jnp.max(energy, axis=-1, keepdims=True)
    p = jnp.exp(energy - m)
    l = jnp.sum(p, axis=-1, keepdims=True)
    att = p * pl.reciprocal(l, approx=True)                  # (Np, Np)

    # --- o_small[c, n] = sum_m v[c, m] * att[n, m]   (V @ att^T). ---
    o_small = jax.lax.dot_general(
        v, att, (((1,), (1,)), ((), ())),
        preferred_element_type=jnp.float32)                  # (C, Np)

    # --- Nearest upsample == broadcast over the phase slabs; add residual. ---
    for s in range(s_blocks):
        out_ref[s] = o_small + x_ref[s]


def bam_pallas(x, params, ds):
    B, C, H, W = x.shape
    assert H % ds == 0 and W % ds == 0
    h, w = H // ds, W // ds
    N = h * w
    S = ds * ds
    Np = ((N + 127) // 128) * 128                 # lane-dense pooled spatial
    Kc = C // 8
    Kp = ((Kc + 7) // 8) * 8                      # sublane-aligned q/k rows
    Kall = 2 * Kp + C
    scale = float(Kc) ** (-0.5)

    wq, bq, wk, bk, wv, bv = [p.astype(jnp.float32) for p in params]

    # Fused, zero-padded 1x1-conv weights: rows [q (Kp) ; k (Kp) ; v (C)].
    w_all = jnp.zeros((Kall, C), jnp.float32)
    w_all = w_all.at[:Kc].set(wq).at[Kp:Kp + Kc].set(wk).at[2 * Kp:].set(wv)
    b_all = jnp.zeros((Kall, 1), jnp.float32)
    b_all = (b_all.at[:Kc, 0].set(bq)
                  .at[Kp:Kp + Kc, 0].set(bk)
                  .at[2 * Kp:, 0].set(bv))

    # Phase-slab layout (B, ds*ds, C, N): pooling = mean over axis 1, nearest
    # upsample = broadcast over axis 1.  Pad N to a multiple of 128 lanes.
    x_r = x.astype(jnp.float32).reshape(B, C, h, ds, w, ds)
    x_r = x_r.transpose(0, 3, 5, 1, 2, 4).reshape(B, S, C, N)
    if Np != N:
        x_r = jnp.pad(x_r, ((0, 0), (0, 0), (0, 0), (0, Np - N)))

    kernel = functools.partial(_bam_kernel, kp=Kp, n_real=N,
                               inv_pool=1.0 / float(S), scale=scale)

    # Explicit VMEM budget: x/out blocks (double-buffered) + weights +
    # (N,N) softmax tiles + (·,N) intermediates, with 2x headroom.
    est = (2 * 2 * S * C * Np * 4
           + 2 * (Kall * C + Kall) * 4
           + 3 * Np * Np * 4
           + 4 * (Kall + 2 * C) * Np * 4)
    vmem_limit = int(min(max(2 * est, 32 * 1024 * 1024), 64 * 1024 * 1024))

    grid_spec = pltpu.PrefetchScalarGridSpec(
        num_scalar_prefetch=0,
        grid=(B,),
        in_specs=[
            pl.BlockSpec((None, S, C, Np), lambda b: (b, 0, 0, 0)),  # x slabs
            pl.BlockSpec((Kall, C), lambda b: (0, 0)),               # fused W
            pl.BlockSpec((Kall, 1), lambda b: (0, 0)),               # fused b
        ],
        out_specs=pl.BlockSpec((None, S, C, Np), lambda b: (b, 0, 0, 0)),
    )

    out_r = pl.pallas_call(
        kernel,
        out_shape=jax.ShapeDtypeStruct((B, S, C, Np), jnp.float32),
        grid_spec=grid_spec,
        compiler_params=pltpu.CompilerParams(
            dimension_semantics=("parallel",),
            vmem_limit_bytes=vmem_limit),
    )(x_r, w_all, b_all)

    # Undo the phase-slab layout (drop lane padding) -> (B, C, H, W).
    out = out_r[..., :N].reshape(B, ds, ds, C, h, w)
    out = out.transpose(0, 3, 4, 1, 5, 2).reshape(B, C, H, W)
    return out


def bam_reference(x, params, ds):
    """Pure-JAX reference matching the PyTorch forward."""
    wq, bq, wk, bk, wv, bv = params
    B, C, H, W = x.shape
    h, w = H // ds, W // ds
    Kc = C // 8
    xp = x.reshape(B, C, h, ds, w, ds).mean(axis=(3, 5))       # AvgPool2d(ds)
    xpf = xp.reshape(B, C, h * w)
    q = jnp.einsum('kc,bcn->bkn', wq, xpf) + bq[None, :, None]
    k = jnp.einsum('kc,bcn->bkn', wk, xpf) + bk[None, :, None]
    v = jnp.einsum('oc,bcn->bon', wv, xpf) + bv[None, :, None]
    energy = (Kc ** -0.5) * jnp.einsum(
        'bkn,bkm->bnm', q, k, precision=jax.lax.Precision.HIGHEST)
    att = jax.nn.softmax(energy, axis=-1)
    o = jnp.einsum('bcm,bnm->bcn', v, att).reshape(B, C, h, w)
    o_big = jnp.broadcast_to(
        o[:, :, :, None, :, None], (B, C, h, ds, w, ds)).reshape(B, C, H, W)
    return o_big + x


if __name__ == "__main__":
    # Small shapes consistent with the module: in_dim must be >= 8.
    B, C, H, W = 2, 16, 16, 16
    ds = 2
    Kc = C // 8

    key = jax.random.PRNGKey(0)
    kx, k1, k2, k3, k4, k5, k6 = jax.random.split(key, 7)

    x = jax.random.normal(kx, (B, C, H, W), dtype=jnp.float32)

    # Deterministic synthetic parameters (1x1 conv weights as (out, in)).
    wq = 0.3 * jax.random.normal(k1, (Kc, C), dtype=jnp.float32)
    bq = 0.1 * jax.random.normal(k2, (Kc,), dtype=jnp.float32)
    wk = 0.3 * jax.random.normal(k3, (Kc, C), dtype=jnp.float32)
    bk = 0.1 * jax.random.normal(k4, (Kc,), dtype=jnp.float32)
    wv = 0.3 * jax.random.normal(k5, (C, C), dtype=jnp.float32)
    bv = 0.1 * jax.random.normal(k6, (C,), dtype=jnp.float32)
    params = (wq, bq, wk, bk, wv, bv)

    out = jax.block_until_ready(bam_pallas(x, params, ds))
    ref = jax.block_until_ready(bam_reference(x, params, ds))

    # Tolerance accounts for deliberately using default (bf16-multiply) MXU
    # precision on the QKV / AV matmuls and the approximate EUP reciprocal in
    # the softmax, per the performance guidance.
    np.testing.assert_allclose(np.asarray(out), np.asarray(ref),
                               rtol=1e-2, atol=1e-2)
    print("KERNEL_OK")
</pallas_src>

<mosaic_0001>
module attributes {stable_mosaic.version = 11 : i64} {
  func.func @_bam_kernel(%arg0: i32, %arg1: memref<1x4x16x128xf32, #tpu.memory_space<vmem>>, %arg2: memref<32x16xf32, #tpu.memory_space<vmem>>, %arg3: memref<32x1xf32, #tpu.memory_space<vmem>>, %arg4: memref<1x4x16x128xf32, #tpu.memory_space<vmem>>) attributes {dimension_semantics = [#tpu.dimension_semantics<parallel>], iteration_bounds = array<i64: 2>, scalar_prefetch = 0 : i64, scratch_operands = 0 : i64, tpu.core_type = #tpu.core_type<tc>, window_params = [{transform_indices = @transform_0, window_bounds = array<i64: 1, 4, 16, 128>}, {pipeline_mode = #tpu.pipeline_mode<synchronous>, transform_indices = @transform_1, window_bounds = array<i64: 32, 16>}, {pipeline_mode = #tpu.pipeline_mode<synchronous>, transform_indices = @transform_2, window_bounds = array<i64: 32, 1>}, {transform_indices = @transform_3, window_bounds = array<i64: 1, 4, 16, 128>}]} {
    %c0 = arith.constant 0 : index
    %c0_0 = arith.constant 0 : index
    %c0_1 = arith.constant 0 : index
    %c0_2 = arith.constant 0 : index
    %0 = vector.load %arg1[%c0, %c0_0, %c0_1, %c0_2] : memref<1x4x16x128xf32, #tpu.memory_space<vmem>>, vector<1x1x16x128xf32>
    %1 = vector.shape_cast %0 : vector<1x1x16x128xf32> to vector<16x128xf32>
    %c0_3 = arith.constant 0 : index
    %c1 = arith.constant 1 : index
    %c0_4 = arith.constant 0 : index
    %c0_5 = arith.constant 0 : index
    %2 = vector.load %arg1[%c0_3, %c1, %c0_4, %c0_5] : memref<1x4x16x128xf32, #tpu.memory_space<vmem>>, vector<1x1x16x128xf32>
    %3 = vector.shape_cast %2 : vector<1x1x16x128xf32> to vector<16x128xf32>
    %4 = arith.addf %1, %3 : vector<16x128xf32>
    %c0_6 = arith.constant 0 : index
    %c2 = arith.constant 2 : index
    %c0_7 = arith.constant 0 : index
    %c0_8 = arith.constant 0 : index
    %5 = vector.load %arg1[%c0_6, %c2, %c0_7, %c0_8] : memref<1x4x16x128xf32, #tpu.memory_space<vmem>>, vector<1x1x16x128xf32>
    %6 = vector.shape_cast %5 : vector<1x1x16x128xf32> to vector<16x128xf32>
    %7 = arith.addf %4, %6 : vector<16x128xf32>
    %c0_9 = arith.constant 0 : index
    %c3 = arith.constant 3 : index
    %c0_10 = arith.constant 0 : index
    %c0_11 = arith.constant 0 : index
    %8 = vector.load %arg1[%c0_9, %c3, %c0_10, %c0_11] : memref<1x4x16x128xf32, #tpu.memory_space<vmem>>, vector<1x1x16x128xf32>
    %9 = vector.shape_cast %8 : vector<1x1x16x128xf32> to vector<16x128xf32>
    %10 = arith.addf %7, %9 : vector<16x128xf32>
    %cst = arith.constant 2.500000e-01 : f32
    %11 = vector.broadcast %cst : f32 to vector<16x128xf32>
    %12 = arith.mulf %10, %11 : vector<16x128xf32>
    %c0_12 = arith.constant 0 : index
    %c0_13 = arith.constant 0 : index
    %13 = vector.load %arg2[%c0_12, %c0_13] : memref<32x16xf32, #tpu.memory_space<vmem>>, vector<32x16xf32>
    %cst_14 = arith.constant dense<0.000000e+00> : vector<32x128xf32>
    %14 = tpu.matmul %13, %12, %cst_14 {dimension_numbers = #tpu.dot_dimension_numbers<[1], [0], [0], [1], [0, 0, 1, 1], [], []>} : vector<32x16xf32>, vector<16x128xf32>, vector<32x128xf32> -> vector<32x128xf32>
    %c0_15 = arith.constant 0 : index
    %c0_16 = arith.constant 0 : index
    %15 = vector.load %arg3[%c0_15, %c0_16] : memref<32x1xf32, #tpu.memory_space<vmem>>, vector<32x1xf32>
    %16 = vector.broadcast %15 : vector<32x1xf32> to vector<32x128xf32>
    %17 = arith.addf %14, %16 : vector<32x128xf32>
    %18 = vector.extract_strided_slice %17 {offsets = [0, 0], sizes = [8, 128], strides = [1, 1]} : vector<32x128xf32> to vector<8x128xf32>
    %cst_17 = arith.constant 0.707106769 : f32
    %19 = vector.broadcast %cst_17 : f32 to vector<8x128xf32>
    %20 = arith.mulf %18, %19 : vector<8x128xf32>
    %21 = vector.extract_strided_slice %17 {offsets = [8, 0], sizes = [8, 128], strides = [1, 1]} : vector<32x128xf32> to vector<8x128xf32>
    %22 = vector.extract_strided_slice %17 {offsets = [16, 0], sizes = [16, 128], strides = [1, 1]} : vector<32x128xf32> to vector<16x128xf32>
    %cst_18 = arith.constant dense<0.000000e+00> : vector<128x128xf32>
    %23 = tpu.matmul %20, %21, %cst_18 {dimension_numbers = #tpu.dot_dimension_numbers<[0], [0], [1], [1], [0, 1, 1, 1], [], []>, precision = #tpu.contract_precision<fp32>} : vector<8x128xf32>, vector<8x128xf32>, vector<128x128xf32> -> vector<128x128xf32>
    %24 = tpu.iota {dimensions = array<i32: 1>} : vector<128x128xi32>
    %c64_i32 = arith.constant 64 : i32
    %25 = vector.broadcast %c64_i32 : i32 to vector<128x128xi32>
    %26 = arith.cmpi slt, %24, %25 : vector<128x128xi32>
    %cst_19 = arith.constant -1.000000e+30 : f32
    %27 = vector.broadcast %cst_19 : f32 to vector<128x128xf32>
    %28 = arith.select %26, %23, %27 : vector<128x128xi1>, vector<128x128xf32>
    %cst_20 = arith.constant dense<0xFF800000> : vector<128xf32>
    %29 = vector.multi_reduction <maximumf>, %28, %cst_20 [1] : vector<128x128xf32> to vector<128xf32>
    %30 = vector.shape_cast %29 : vector<128xf32> to vector<128x1xf32>
    %31 = vector.broadcast %30 : vector<128x1xf32> to vector<128x128xf32>
    %32 = arith.subf %28, %31 : vector<128x128xf32>
    %33 = math.exp %32 : vector<128x128xf32>
    %cst_21 = arith.constant dense<0.000000e+00> : vector<128xf32>
    %34 = vector.multi_reduction <add>, %33, %cst_21 [1] : vector<128x128xf32> to vector<128xf32>
    %35 = vector.shape_cast %34 : vector<128xf32> to vector<128x1xf32>
    %36 = tpu.reciprocal %35 {approx = true} : vector<128x1xf32> -> vector<128x1xf32>
    %37 = vector.broadcast %36 : vector<128x1xf32> to vector<128x128xf32>
    %38 = arith.mulf %33, %37 : vector<128x128xf32>
    %cst_22 = arith.constant dense<0.000000e+00> : vector<16x128xf32>
    %39 = tpu.matmul %22, %38, %cst_22 {dimension_numbers = #tpu.dot_dimension_numbers<[1], [1], [0], [0], [0, 0, 1, 0], [], []>} : vector<16x128xf32>, vector<128x128xf32>, vector<16x128xf32> -> vector<16x128xf32>
    %c0_23 = arith.constant 0 : index
    %c0_24 = arith.constant 0 : index
    %c0_25 = arith.constant 0 : index
    %c0_26 = arith.constant 0 : index
    %40 = vector.load %arg1[%c0_23, %c0_24, %c0_25, %c0_26] : memref<1x4x16x128xf32, #tpu.memory_space<vmem>>, vector<1x1x16x128xf32>
    %41 = vector.shape_cast %40 : vector<1x1x16x128xf32> to vector<16x128xf32>
    %42 = arith.addf %39, %41 : vector<16x128xf32>
    %c0_27 = arith.constant 0 : index
    %c0_28 = arith.constant 0 : index
    %c0_29 = arith.constant 0 : index
    %c0_30 = arith.constant 0 : index
    %43 = vector.load %arg4[%c0_27, %c0_28, %c0_29, %c0_30] : memref<1x4x16x128xf32, #tpu.memory_space<vmem>>, vector<1x1x16x128xf32>
    %44 = vector.shape_cast %43 : vector<1x1x16x128xf32> to vector<16x128xf32>
    %45 = vector.shape_cast %42 : vector<16x128xf32> to vector<1x1x16x128xf32>
    tpu.vector_store %arg4[%c0_27, %c0_28, %c0_29, %c0_30], %45 {strides = array<i32>} : memref<1x4x16x128xf32, #tpu.memory_space<vmem>>, vector<1x1x16x128xf32>,
    %c0_31 = arith.constant 0 : index
    %c1_32 = arith.constant 1 : index
    %c0_33 = arith.constant 0 : index
    %c0_34 = arith.constant 0 : index
    %46 = vector.load %arg1[%c0_31, %c1_32, %c0_33, %c0_34] : memref<1x4x16x128xf32, #tpu.memory_space<vmem>>, vector<1x1x16x128xf32>
    %47 = vector.shape_cast %46 : vector<1x1x16x128xf32> to vector<16x128xf32>
    %48 = arith.addf %39, %47 : vector<16x128xf32>
    %c0_35 = arith.constant 0 : index
    %c1_36 = arith.constant 1 : index
    %c0_37 = arith.constant 0 : index
    %c0_38 = arith.constant 0 : index
    %49 = vector.load %arg4[%c0_35, %c1_36, %c0_37, %c0_38] : memref<1x4x16x128xf32, #tpu.memory_space<vmem>>, vector<1x1x16x128xf32>
    %50 = vector.shape_cast %49 : vector<1x1x16x128xf32> to vector<16x128xf32>
    %51 = vector.shape_cast %48 : vector<16x128xf32> to vector<1x1x16x128xf32>
    tpu.vector_store %arg4[%c0_35, %c1_36, %c0_37, %c0_38], %51 {strides = array<i32>} : memref<1x4x16x128xf32, #tpu.memory_space<vmem>>, vector<1x1x16x128xf32>,
    %c0_39 = arith.constant 0 : index
    %c2_40 = arith.constant 2 : index
    %c0_41 = arith.constant 0 : index
    %c0_42 = arith.constant 0 : index
    %52 = vector.load %arg1[%c0_39, %c2_40, %c0_41, %c0_42] : memref<1x4x16x128xf32, #tpu.memory_space<vmem>>, vector<1x1x16x128xf32>
    %53 = vector.shape_cast %52 : vector<1x1x16x128xf32> to vector<16x128xf32>
    %54 = arith.addf %39, %53 : vector<16x128xf32>
    %c0_43 = arith.constant 0 : index
    %c2_44 = arith.constant 2 : index
    %c0_45 = arith.constant 0 : index
    %c0_46 = arith.constant 0 : index
    %55 = vector.load %arg4[%c0_43, %c2_44, %c0_45, %c0_46] : memref<1x4x16x128xf32, #tpu.memory_space<vmem>>, vector<1x1x16x128xf32>
    %56 = vector.shape_cast %55 : vector<1x1x16x128xf32> to vector<16x128xf32>
    %57 = vector.shape_cast %54 : vector<16x128xf32> to vector<1x1x16x128xf32>
    tpu.vector_store %arg4[%c0_43, %c2_44, %c0_45, %c0_46], %57 {strides = array<i32>} : memref<1x4x16x128xf32, #tpu.memory_space<vmem>>, vector<1x1x16x128xf32>,
    %c0_47 = arith.constant 0 : index
    %c3_48 = arith.constant 3 : index
    %c0_49 = arith.constant 0 : index
    %c0_50 = arith.constant 0 : index
    %58 = vector.load %arg1[%c0_47, %c3_48, %c0_49, %c0_50] : memref<1x4x16x128xf32, #tpu.memory_space<vmem>>, vector<1x1x16x128xf32>
    %59 = vector.shape_cast %58 : vector<1x1x16x128xf32> to vector<16x128xf32>
    %60 = arith.addf %39, %59 : vector<16x128xf32>
    %c0_51 = arith.constant 0 : index
    %c3_52 = arith.constant 3 : index
    %c0_53 = arith.constant 0 : index
    %c0_54 = arith.constant 0 : index
    %61 = vector.load %arg4[%c0_51, %c3_52, %c0_53, %c0_54] : memref<1x4x16x128xf32, #tpu.memory_space<vmem>>, vector<1x1x16x128xf32>
    %62 = vector.shape_cast %61 : vector<1x1x16x128xf32> to vector<16x128xf32>
    %63 = vector.shape_cast %60 : vector<16x128xf32> to vector<1x1x16x128xf32>
    tpu.vector_store %arg4[%c0_51, %c3_52, %c0_53, %c0_54], %63 {strides = array<i32>} : memref<1x4x16x128xf32, #tpu.memory_space<vmem>>, vector<1x1x16x128xf32>,
    return
  }
  func.func @transform_0(%arg0: i32) -> (i32, i32, i32, i32) {
    %c0_i32 = arith.constant 0 : i32
    %c0_i32_0 = arith.constant 0 : i32
    %c0_i32_1 = arith.constant 0 : i32
    %c0_i32_2 = arith.constant 0 : i32
    return %arg0, %c0_i32, %c0_i32_0, %c0_i32_1 : i32, i32, i32, i32
  }
  func.func @transform_1(%arg0: i32) -> (i32, i32) {
    %c0_i32 = arith.constant 0 : i32
    %c0_i32_0 = arith.constant 0 : i32
    %c0_i32_1 = arith.constant 0 : i32
    return %c0_i32, %c0_i32_0 : i32, i32
  }
  func.func @transform_2(%arg0: i32) -> (i32, i32) {
    %c0_i32 = arith.constant 0 : i32
    %c0_i32_0 = arith.constant 0 : i32
    %c0_i32_1 = arith.constant 0 : i32
    return %c0_i32, %c0_i32_0 : i32, i32
  }
  func.func @transform_3(%arg0: i32) -> (i32, i32, i32, i32) {
    %c0_i32 = arith.constant 0 : i32
    %c0_i32_0 = arith.constant 0 : i32
    %c0_i32_1 = arith.constant 0 : i32
    %c0_i32_2 = arith.constant 0 : i32
    return %arg0, %c0_i32, %c0_i32_0, %c0_i32_1 : i32, i32, i32, i32
  }
}

</mosaic_0001>

<bundles_post_ra>
// kernel: tpu_custom_call.1
= control target key start
LH: loop header
LB: loop body
LE: loop exit
PB: predicated region body
PF: predicated region fallthrough
CT: control target
= control target key end

     0   :  { %8 = vsyncpa [#allocation3], 0  ;;  %s3162_s0 = inlined_call_operand.hbm [shape: f32[2,4,16,128], index: 0, kind: input, shape index: {}]   ;;  %s3163_s1 = inlined_call_operand.vmem [shape: f32[32,16], index: 1, kind: input, shape index: {}]   ;;  %s3164_s2 = inlined_call_operand.vmem [shape: f32[32,1], index: 2, kind: input, shape index: {}]   ;;  %s3165_s3 = inlined_call_operand.hbm [shape: f32[2,4,16,128], index: 3, kind: output, shape index: {}]  }
   0x1   :  { %10 = vsyncpa [#allocation3 + $0x1], 0 }
   0x2   :  { %11 = vsyncpa [#allocation4], 0 }
   0x3   :  { %13 = vsyncpa [#allocation4 + $0x1], 0  ;;  %s2583_s12 = smov 0   ;;  %s2585_s13 = smov 0  }
   0x4   :  { %s2587_s14 = smov 0   ;;  %s2589_s15 = smov 0  }
   0x5 LB: > { %s2604_s16 = sadd.s32 4294967295, %s2554_s15   ;;  %s1857_s17 = sadd.s32 4294967294, %s2554_s15   ;;  %s2554_s15 = sphi %s2589_s15, %s3178_s15   ;;  %s2550_s14 = sphi %s2587_s14, %s3177_s14   ;;  %s2546_s13 = sphi %s2585_s13, %s3176_s13   ;;  %s2542_s12 = sphi %s2583_s12, %s3175_s12  }
   0x6   : > { %s2608_s18 = sadd.s32 1, %s2554_s15   ;;  %s26_s19 = sadd.s32 1, %s2550_s14 }
   0x7   : > { %s23_s20 = ssub.s32 %s2554_s15, %s2608_s18  ;;  %p33_p0 = scmp.ne.s32.totalorder %s2550_s14, %s2546_s13 }
   0x8   : > { %p24_p1 = scmp.eq.s32.totalorder %s23_s20, 0  ;;  %p34_p2 = scmp.eq.s32.totalorder %s2554_s15, 0 }
   0x9   : > { %p39_p3 = scmp.ne.s32.totalorder %s2546_s13, %s2542_s12  ;;  %p40_p4 = scmp.eq.s32.totalorder %s2604_s16, 0 }
   0xa   : > { %s2620_s21 = scalar_select %p24_p1, %s2550_s14, %s26_s19  }
   0xb   : > { %p2622_p5 = por %p34_p2, %p33_p0  ;;  %p2626_p6 = por %p40_p4, %p39_p3 }
   0xc   : > { %p105_p7 = scmp.eq.s32.totalorder %s2604_s16, 1  ;;  %p111_p8 = scmp.eq.s32.totalorder %s1857_s17, 1 }
   0xd   : > { %p2350_p10 = scmp.lt.s32.totalorder %s2554_s15, 2  ;;  %s137_s26 = sand.u32 1, %s2550_s14  }
   0xe   : > { %p2633_p11 = por %p105_p7, %p33_p0  ;;  %p2637_p12 = por %p111_p8, %p39_p3 }
   0xf   : > { %s1893_s27 = sshll.u32 %s2554_s15, 10  ;;  %s1860_s28 = sshll.u32 %s137_s26, 6 }
  0x10   : > { %s3169_s24 = scalar_select %p2633_p11, 1, 0 }
  0x11   : > { %s3170_s25 = scalar_select %p2637_p12, 1, 0 }
  0x12   : > { %s2646_s4 = scalar_lea.hbm %s3162_s0, %s1893_s27  ;;  %s141_s5 = scalar_lea.vmem [#allocation2], %s1860_s28 }
  0x13   : > { %s148_s6 = sshll.u32 %s141_s5, 4  ;;  %p2650_p13 = pnand %p2350_p10, %p2622_p5  ;;  %s2654_s6 = int_to_ptr.vmem [resolvable:$true] %s148_s6 }
  0x14   : > { %s2656_s8 = scalar_lea.sflag [#allocation3], %s137_s26  ;;  %s2458_s9 = scalar_lea.hbm %s2646_s4, 1024 }
  0x15   : > { %p2459_p0 = scmp.ne.s32.totalorder %s2646_s4, %s2458_s9  ;;  %p2460_p1 = pneg %p2650_p13 }
  0x16   : > { %s2463_s17 = scalar_lea.hbm %s3162_s0, 2048  ;;  %p2464_p4 = scmp.lt.u32.totalorder %s2646_s4, %s3162_s0 }
  0x17   : > { %p2461_p2 = pnand %p2460_p1, %p2459_p0  ;;  %p2465_p5 = scmp.lt.u32.totalorder %s2463_s17, %s2458_s9 }
  0x18   : > { %p2467_p8 = scmp.lt.u32.totalorder %s2458_s9, %s2646_s4 }
  0x19   : > { %p2462_p3 = pneg %p2461_p2  ;;  %p2466_p7 = por %p2465_p5, %p2464_p4 }
  0x1b   : > { %p2468_p10 = por %p2467_p8, %p2466_p7 }
  0x1d   : > { %p2469_p9 = pnand %p2468_p10, %p2462_p3 }
  0x1f   : > { %2472 = shalt.err (!%p2469_p9)
}
  0x20   : > { %s2473_s22 = scalar_lea.vmem %s2654_s6, 1024  ;;  %s2556_s26 = smov [#allocation2]  }
  0x21   : > { %p2474_p0 = scmp.ne.s32.totalorder %s2654_s6, %s2473_s22  ;;  %s2478_s27 = sshll.u32 %s2556_s26, 4  ;;  %s2479_s27 = int_to_ptr.vmem [resolvable:$false] %s2478_s27 }
  0x22   : > { %s2480_s28 = scalar_lea.vmem %s2479_s27, 2048  ;;  %p2481_p11 = scmp.lt.s32.totalorder %s2654_s6, %s2479_s27 }
  0x23   : > { %p2476_p2 = pnand %p2474_p0, %p2460_p1  ;;  %p2482_p4 = scmp.lt.s32.totalorder %s2480_s28, %s2473_s22 }
  0x25   : > { %p2477_p12 = pneg %p2476_p2  ;;  %p2483_p5 = por %p2482_p4, %p2481_p11 }
  0x27   : > { %p2484_p7 = pnand %p2483_p5, %p2477_p12 }
  0x29   : > { %2487 = shalt.err (!%p2484_p7)
}
  0x2a   : > { %s2557_s29 = smov 128   ;;  %s2558_s30 = smov 8  }
  0x2b   : > { %2345 = dma.hbm_to_vmem [thread:$0]  (!%p2650_p13), %s2646_s4, 1024, %s2654_s6, %s2656_s8, %s2557_s29, %s2557_s29, %s2558_s30  }
  0x2c   : > { %p1863_p9 = scmp.ge.s32.totalorder %s2554_s15, 1  ;;  %p156_p1 = scmp.lt.s32.totalorder %s2554_s15, 3 }
  0x2e   : > { %p157_p3 = pnand %p1863_p9, %p156_p1 }
  0x2f   : > { %s2687_s5 = sand.u32 (!%p157_p3), 1, %s2546_s13  }
  0x30   : > { %160 = sbr.rel (%p157_p3) target bundleno = 1381 (0x565), region = 32  ;;  %s1864_s9 = sshll.u32 (!%p157_p3), %s2687_s5, 6 }
  0x31   : > { %s163_s10 = scalar_lea.sflag (!%p157_p3), [#allocation3], %s2687_s5  ;;  %s2693_s11 = scalar_lea.vmem (!%p157_p3), [#allocation2], %s1864_s9 }
  0x37   : > { %2533 = dma.done.wait (%p2626_p6), %s163_s10, 1024  }
  0x38   : > { %2535 = vsyncadd (%p2626_p6), %s163_s10, 4294966272  ;;  %v2559_v0 = vmov 0   ;;  %v189_v1 = vld [vmem:[%s2693_s11] sm:$0xff]  ;;  %v190_v2 = vld [vmem:[%s2693_s11 + $0x8] sm:$0xff]  ;;  %vm236_vm0 = vcmask 130048   ;;  %vm367_vm1 = vcmask 64512  }
  0x39   : > { %2390 = vset.pattern.permute.xlu0 %v2559_v0  ;;  %v1866_v3 = vld [vmem:[%s2693_s11 + $0x10] sm:$0xff]  ;;  %v1867_v4 = vld [vmem:[%s2693_s11 + $0x18] sm:$0xff]  ;;  %v1868_v6 = vld [vmem:[%s2693_s11 + $0x20] sm:$0xff]  ;;  %s1894_s4 = sshll.u32 %s2604_s16, 10  ;;  %s188_s6 = scalar_lea.vmem [#allocation5], %s1864_s9 }
  0x3a   : > { %v194_v5 = vadd.f32 %v1866_v3, %v189_v1  ;;  %v1869_v7 = vld [vmem:[%s2693_s11 + $0x28] sm:$0xff]  ;;  %v195_v8 = vadd.f32 %v1867_v4, %v190_v2  ;;  %v1870_v9 = vld [vmem:[%s2693_s11 + $0x30] sm:$0xff]  ;;  %v208_v10 = vld [vmem:[%s3163_s1] sm:$0xff]  ;;  %s1784_s7 = sshll.u32 %s188_s6, 4  ;;  %s3115_s19 = scalar_lea.hbm %s3165_s3, %s1894_s4  ;;  %s3117_s7 = int_to_ptr.vmem [resolvable:$true] %s1784_s7 }
  0x3b   : > { %v1871_v12 = vld [vmem:[%s2693_s11 + $0x38] sm:$0xff]  ;;  %2025 = vmatprep.mubr.msk.f32.mxu0 %vm236_vm0, %v208_v10  ;;  %v212_v13 = vld [vmem:[%s3164_s2] sm:$0xff]  ;;  %v213_v16 = vld [vmem:[%s3164_s2 + $0x8] sm:$0xff]  ;;  %s1771_s16 = scalar_lea.sflag [#allocation4], %s2687_s5  ;;  %s2488_s9 = scalar_lea.vmem %s3117_s7, 1024 }
  0x3c   : > { %v199_v11 = vadd.f32 %v1868_v6, %v194_v5  ;;  %v200_v14 = vadd.f32 %v1869_v7, %v195_v8  ;;  %218 = vperm.xlu0 %2390, %v212_v13   ;;  %v209_v21 = vld [vmem:[%s3163_s1 + $0x8] sm:$0xff]  ;;  %v210_v34 = vld [vmem:[%s3163_s1 + $0x10] sm:$0xff]  ;;  %v211_v35 = vld [vmem:[%s3163_s1 + $0x18] sm:$0xff]  ;;  %p2489_p6 = scmp.ne.s32.totalorder %s3117_s7, %s2488_s9  ;;  %p3172_p11 = scmp.ne.s32.totalorder %s3169_s24, 0 }
  0x3e   : > { %v204_v15 = vadd.f32 %v1870_v9, %v199_v11  ;;  %v205_v17 = vadd.f32 %v1871_v12, %v200_v14  ;;  %p2490_p12 = pnand %p2489_p6, %p3172_p11 }
  0x40   : > { %v206_v18 = vmul.f32 0.25, %v204_v15  ;;  %v207_v19 = vmul.f32 0.25, %v205_v17  ;;  %223 = vperm.xlu0 %2390, %v213_v16   ;;  %p2491_p13 = pneg %p2490_p12 }
  0x42   : > { %v2222_v20 = vpack.c.bf16 %v207_v19, %v206_v18 }
  0x44   : > { %2223 = vmatprep.subr.bf16.mxu0 %v2222_v20 }
  0x45   : > { %2225 = vmatpush3.bf16.msra.mxu0 %v2222_v20 }
  0x48   : > { %2026 = vmatmul.mubr.msk.f32.vlgmr.msra.gmra.mrb[0].mxu0 %vm236_vm0, %v209_v21 }
  0x49   : > { %2028 = vmatprep.mubr.msk.f32.mxu0 %vm236_vm0, %v210_v34 }
  0x4c   : > { %2029 = vmatmul.mubr.msk.f32.gmra.mrb[2].mxu0 %vm236_vm0, %v211_v35 }
  0xbb   : > { %v219_v22 = vpop.permute.xlu0 %218 }
  0xbf   : > { %v224_v23 = vpop.permute.xlu0 %223 }
 0x11b   : > { %v2027_v24 = vpop.f32.mrb[0].mxu0 }
 0x11c   : > { %v321_v25 = vadd.f32 %v2027_v24, %v224_v23  ;;  %v315_v26 = vpop.f32.mrb[1].mxu0 }
 0x11d   : > { %v316_v27 = vadd.f32 %v315_v26, %v219_v22 }
 0x11e   : > { %v2721_v28 = vand.u32 4294901760, %v321_v25 }
 0x11f   : > { %v334_v29 = vmul.f32 0.70710677, %v316_v27 }
 0x120   : > { %v644_v30 = vsub.f32 %v321_v25, %v2721_v28  ;;  %2031 = vmatprep.subr.mxu0 %v2721_v28 }
 0x121   : > { %2032 = vmatpush3.msra.mxu0 %v2721_v28  ;;  %335 = vxpose.xlu1.b32.start.end [1/1] (short) %v334_v29, 128 }
 0x122   : > { %2083 = vmatprep.subr.mxu1 %v644_v30  ;;  %v2726_v31 = vand.u32 4294901760, %v644_v30 }
 0x123   : > { %2084 = vmatpush3.msra.mxu1 %v644_v30 }
 0x124   : > { %2109 = vmatprep.subr.mxu1 %v2721_v28  ;;  %v646_v32 = vsub.f32 %v644_v30, %v2726_v31 }
 0x126   : > { %v647_v33 = vand.u32 4294901760, %v646_v32 }
 0x128   : > { %2057 = vmatprep.subr.mxu0 %v647_v33 }
 0x13f   : > { %2391 = vset.pattern.permute.xlu1 %v2559_v0 }
 0x1a1   : > { %v351_v36 = vpop.trf.xlu1 }
 0x1a2   : > { %v369_v37 = vsel %vm367_vm1, %v351_v36, 0 }
 0x1a3   : > { %v2739_v38 = vand.u32 4294901760, %v369_v37 }
 0x1a5   : > { %v2742_v39 = vsub.f32 %v369_v37, %v2739_v38  ;;  %v352_v40 = vpop.trf.xlu1 }
 0x1a6   : > { %v372_v41 = vsel %vm367_vm1, %v352_v40, 0 }
 0x1a7   : > { %v484_v42 = vand.u32 4294901760, %v2742_v39  ;;  %v2746_v43 = vand.u32 4294901760, %v372_v41  ;;  %2085 = vmatprep.mubr.f32.mxu1 %v2742_v39 }
 0x1a9   : > { %v2750_v44 = vsub.f32 %v372_v41, %v2746_v43  ;;  %v353_v45 = vpop.trf.xlu1  ;;  %v485_v46 = vsub.f32 %v2742_v39, %v484_v42 }
 0x1aa   : > { %v375_v47 = vsel %vm367_vm1, %v353_v45, 0 }
 0x1ab   : > { %v494_v48 = vand.u32 4294901760, %v2750_v44  ;;  %v2757_v49 = vand.u32 4294901760, %v375_v47  ;;  %2086 = vmatmul.mubr.f32.vlgmr.msra.gmra.mrb[0].mxu1 %v2750_v44  ;;  %v486_v50 = vand.u32 4294901760, %v485_v46 }
 0x1ac   : > { %2110 = vmatpush3.msra.mxu1 %v2721_v28 }
 0x1ad   : > { %v495_v51 = vsub.f32 %v2750_v44, %v494_v48  ;;  %v2765_v52 = vsub.f32 %v375_v47, %v2757_v49  ;;  %2135 = vmatprep.subr.mxu1 %v2726_v31  ;;  %2033 = vmatprep.mubr.f32.mxu0 %v486_v50  ;;  %v354_v53 = vpop.trf.xlu1 }
 0x1ae   : > { %v378_v54 = vsel %vm367_vm1, %v354_v53, 0 }
 0x1af   : > { %v496_v55 = vand.u32 4294901760, %v495_v51  ;;  %v504_v56 = vand.u32 4294901760, %v2765_v52  ;;  %v2770_v57 = vand.u32 4294901760, %v378_v54  ;;  %2088 = vmatprep.mubr.f32.mxu1 %v2765_v52 }
 0x1b1   : > { %v2774_v58 = vsub.f32 %v378_v54, %v2770_v57  ;;  %2034 = vmatmul.mubr.f32.vlgmr.msra.gmra.mrb[4].mxu0 %v496_v55  ;;  %v355_v59 = vpop.trf.xlu1  ;;  %v505_v60 = vsub.f32 %v2765_v52, %v504_v56 }
 0x1b2   : > { %2058 = vmatpush3.msra.mxu0 %v647_v33  ;;  %v381_v61 = vsel %vm367_vm1, %v355_v59, 0 }
 0x1b3   : > { %v514_v62 = vand.u32 4294901760, %v2774_v58  ;;  %v2781_v63 = vand.u32 4294901760, %v381_v61  ;;  %2089 = vmatmul.mubr.f32.gmra.mrb[2].mxu1 %v2774_v58  ;;  %v506_v0 = vand.u32 4294901760, %v505_v60 }
 0x1b5   : > { %v2785_v1 = vsub.f32 %v381_v61, %v2781_v63  ;;  %2036 = vmatprep.mubr.f32.mxu0 %v506_v0  ;;  %v356_v2 = vpop.trf.xlu1  ;;  %v515_v3 = vsub.f32 %v2774_v58, %v514_v62 }
 0x1b6   : > { %v384_v4 = vsel %vm367_vm1, %v356_v2, 0 }
 0x1b7   : > { %v524_v5 = vand.u32 4294901760, %v2785_v1  ;;  %v2792_v6 = vand.u32 4294901760, %v384_v4  ;;  %2091 = vmatprep.mubr.f32.mxu1 %v2785_v1  ;;  %v516_v7 = vand.u32 4294901760, %v515_v3 }
 0x1b9   : > { %v2796_v8 = vsub.f32 %v384_v4, %v2792_v6  ;;  %2037 = vmatmul.mubr.f32.gmra.mrb[6].mxu0 %v516_v7  ;;  %v357_v9 = vpop.trf.xlu1  ;;  %v525_v10 = vsub.f32 %v2785_v1, %v524_v5 }
 0x1ba   : > { %v387_v11 = vsel %vm367_vm1, %v357_v9, 0 }
 0x1bb   : > { %v534_v12 = vand.u32 4294901760, %v2796_v8  ;;  %v2803_v13 = vand.u32 4294901760, %v387_v11  ;;  %2092 = vmatmul.mubr.f32.gmra.mrb[4].mxu1 %v2796_v8  ;;  %v526_v14 = vand.u32 4294901760, %v525_v10 }
 0x1bd   : > { %v2807_v15 = vsub.f32 %v387_v11, %v2803_v13  ;;  %2039 = vmatprep.mubr.f32.mxu0 %v526_v14  ;;  %v358_v16 = vpop.trf.xlu1  ;;  %v535_v17 = vsub.f32 %v2796_v8, %v534_v12  ;;  %v1507_v8 = vlaneseq }
 0x1be   : > { %v390_v18 = vsel %vm367_vm1, %v358_v16, 0 }
 0x1bf   : > { %v544_v19 = vand.u32 4294901760, %v2807_v15  ;;  %v2814_v20 = vand.u32 4294901760, %v390_v18  ;;  %2094 = vmatprep.mubr.f32.mxu1 %v2807_v15  ;;  %v536_v21 = vand.u32 4294901760, %v535_v17 }
 0x1c1   : > { %v2818_v22 = vsub.f32 %v390_v18, %v2814_v20  ;;  %2040 = vmatmul.mubr.f32.gmra.mrb[8].mxu0 %v536_v21  ;;  %v359_v23 = vpop.trf.xlu1  ;;  %v545_v24 = vsub.f32 %v2807_v15, %v544_v19 }
 0x1c2   : > { %v393_v25 = vsel %vm367_vm1, %v359_v23, 0 }
 0x1c3   : > { %v554_v26 = vand.u32 4294901760, %v2818_v22  ;;  %v2825_v27 = vand.u32 4294901760, %v393_v25  ;;  %2095 = vmatmul.mubr.f32.gmra.mrb[6].mxu1 %v2818_v22  ;;  %v546_v29 = vand.u32 4294901760, %v545_v24 }
 0x1c5   : > { %v2829_v30 = vsub.f32 %v393_v25, %v2825_v27  ;;  %2042 = vmatprep.mubr.f32.mxu0 %v546_v29  ;;  %v360_v32 = vpop.trf.xlu1  ;;  %v555_v33 = vsub.f32 %v2818_v22, %v554_v26 }
 0x1c6   : > { %v396_v34 = vsel %vm367_vm1, %v360_v32, 0 }
 0x1c7   : > { %v564_v35 = vand.u32 4294901760, %v2829_v30  ;;  %v2836_v36 = vand.u32 4294901760, %v396_v34  ;;  %2097 = vmatprep.mubr.f32.mxu1 %v2829_v30  ;;  %v556_v37 = vand.u32 4294901760, %v555_v33 }
 0x1c9   : > { %v2840_v40 = vsub.f32 %v396_v34, %v2836_v36  ;;  %2043 = vmatmul.mubr.f32.gmra.mrb[10].mxu0 %v556_v37  ;;  %v361_v41 = vpop.trf.xlu1  ;;  %v565_v45 = vsub.f32 %v2829_v30, %v564_v35 }
 0x1ca   : > { %v399_v46 = vsel %vm367_vm1, %v361_v41, 0 }
 0x1cb   : > { %v574_v47 = vand.u32 4294901760, %v2840_v40  ;;  %v2847_v50 = vand.u32 4294901760, %v399_v46  ;;  %2098 = vmatmul.mubr.f32.gmra.mrb[8].mxu1 %v2840_v40  ;;  %v566_v51 = vand.u32 4294901760, %v565_v45 }
 0x1cd   : > { %v2851_v53 = vsub.f32 %v399_v46, %v2847_v50  ;;  %2045 = vmatprep.mubr.f32.mxu0 %v566_v51  ;;  %v362_v54 = vpop.trf.xlu1  ;;  %v575_v55 = vsub.f32 %v2840_v40, %v574_v47 }
 0x1ce   : > { %v402_v59 = vsel %vm367_vm1, %v362_v54, 0 }
 0x1cf   : > { %v584_v60 = vand.u32 4294901760, %v2851_v53  ;;  %v2858_v61 = vand.u32 4294901760, %v402_v59  ;;  %2100 = vmatprep.mubr.f32.mxu1 %v2851_v53  ;;  %v576_v0 = vand.u32 4294901760, %v575_v55 }
 0x1d1   : > { %v2862_v2 = vsub.f32 %v402_v59, %v2858_v61  ;;  %2046 = vmatmul.mubr.f32.gmra.mrb[12].mxu0 %v576_v0  ;;  %v363_v3 = vpop.trf.xlu1  ;;  %v585_v4 = vsub.f32 %v2851_v53, %v584_v60 }
 0x1d2   : > { %v405_v7 = vsel %vm367_vm1, %v363_v3, 0 }
 0x1d3   : > { %v594_v9 = vand.u32 4294901760, %v2862_v2  ;;  %v2869_v10 = vand.u32 4294901760, %v405_v7  ;;  %2101 = vmatmul.mubr.f32.gmra.mrb[10].mxu1 %v2862_v2  ;;  %v586_v11 = vand.u32 4294901760, %v585_v4 }
 0x1d5   : > { %v603_v14 = vsub.f32 %v405_v7, %v2869_v10  ;;  %2048 = vmatprep.mubr.f32.mxu0 %v586_v11  ;;  %v364_v16 = vpop.trf.xlu1  ;;  %v595_v17 = vsub.f32 %v2862_v2, %v594_v9 }
 0x1d6   : > { %v408_v18 = vsel %vm367_vm1, %v364_v16, 0 }
 0x1d7   : > { %v604_v21 = vand.u32 4294901760, %v603_v14  ;;  %v2875_v23 = vand.u32 4294901760, %v408_v18  ;;  %2103 = vmatprep.mubr.f32.mxu1 %v603_v14  ;;  %v596_v24 = vand.u32 4294901760, %v595_v17 }
 0x1d9   : > { %v613_v25 = vsub.f32 %v408_v18, %v2875_v23  ;;  %2049 = vmatmul.mubr.f32.gmra.mrb[14].mxu0 %v596_v24  ;;  %v365_v29 = vpop.trf.xlu1  ;;  %v605_v32 = vsub.f32 %v603_v14, %v604_v21 }
 0x1da   : > { %v411_v33 = vsel %vm367_vm1, %v365_v29, 0 }
 0x1db   : > { %v614_v34 = vand.u32 4294901760, %v613_v25  ;;  %v2879_v37 = vand.u32 4294901760, %v411_v33  ;;  %2104 = vmatmul.mubr.f32.gmra.mrb[12].mxu1 %v613_v25  ;;  %v606_v41 = vand.u32 4294901760, %v605_v32 }
 0x1dd   : > { %v623_v45 = vsub.f32 %v411_v33, %v2879_v37  ;;  %2051 = vmatprep.mubr.f32.mxu0 %v606_v41  ;;  %v366_v46 = vpop.trf.xlu1  ;;  %v615_v51 = vsub.f32 %v613_v25, %v614_v34 }
 0x1de   : > { %v414_v54 = vsel %vm367_vm1, %v366_v46, 0 }
 0x1df   : > { %v624_v55 = vand.u32 4294901760, %v623_v45  ;;  %v2883_v59 = vand.u32 4294901760, %v414_v54  ;;  %2106 = vmatprep.mubr.f32.mxu1 %v623_v45  ;;  %v616_v0 = vand.u32 4294901760, %v615_v51 }
 0x1e1   : > { %v633_v2 = vsub.f32 %v414_v54, %v2883_v59  ;;  %2052 = vmatmul.mubr.f32.gmra.mrb[16].mxu0 %v616_v0  ;;  %v625_v3 = vsub.f32 %v623_v45, %v624_v55 }
 0x1e3   : > { %v634_v4 = vand.u32 4294901760, %v633_v2  ;;  %2107 = vmatmul.mubr.f32.gmra.mrb[14].mxu1 %v633_v2  ;;  %v626_v7 = vand.u32 4294901760, %v625_v3 }
 0x1e4   : > { %2111 = vmatprep.mubr.f32.mxu1 %v484_v42 }
 0x1e5   : > { %2054 = vmatprep.mubr.f32.mxu0 %v626_v7  ;;  %v635_v11 = vsub.f32 %v633_v2, %v634_v4 }
 0x1e7   : > { %2112 = vmatmul.mubr.f32.vlgmr.msra.gmra.mrb[0].mxu1 %v494_v48  ;;  %v636_v14 = vand.u32 4294901760, %v635_v11 }
 0x1e8   : > { %2136 = vmatpush3.msra.mxu1 %v2726_v31  ;;  %2114 = vmatprep.mubr.f32.mxu1 %v504_v56  ;;  %v2921_v31 = vpop.f32.mrb[2].mxu0 }
 0x1e9   : > { %2161 = vmatprep.subr.mxu1 %v2721_v28  ;;  %2055 = vmatmul.mubr.f32.gmra.mrb[18].mxu0 %v636_v14  ;;  %v2924_v39 = vpop.f32.mrb[3].mxu0 }
 0x1ea   : > { %2059 = vmatprep.mubr.f32.mxu0 %v2739_v38 }
 0x1eb   : > { %2115 = vmatmul.mubr.f32.gmra.mrb[2].mxu1 %v514_v62 }
 0x1ec   : > { %2117 = vmatprep.mubr.f32.mxu1 %v524_v5 }
 0x1ed   : > { %2060 = vmatmul.mubr.f32.vlgmr.msra.gmra.mrb[4].mxu0 %v2746_v43 }
 0x1ee   : > { %2062 = vmatprep.mubr.f32.mxu0 %v2757_v49 }
 0x1ef   : > { %2118 = vmatmul.mubr.f32.gmra.mrb[4].mxu1 %v534_v12  ;;  %v2963_v12 = vand.u32 127, %v1507_v8 }
 0x1f0   : > { %2120 = vmatprep.mubr.f32.mxu1 %v544_v19 }
 0x1f1   : > { %2063 = vmatmul.mubr.f32.gmra.mrb[6].mxu0 %v2770_v57  ;;  %vm1509_vm2 = vcmp.lt.s32.totalorder %v2963_v12, 64 }
 0x1f2   : > { %2065 = vmatprep.mubr.f32.mxu0 %v2781_v63 }
 0x1f3   : > { %2121 = vmatmul.mubr.f32.gmra.mrb[6].mxu1 %v554_v26 }
 0x1f4   : > { %2123 = vmatprep.mubr.f32.mxu1 %v564_v35 }
 0x1f5   : > { %2066 = vmatmul.mubr.f32.gmra.mrb[8].mxu0 %v2792_v6 }
 0x1f6   : > { %2068 = vmatprep.mubr.f32.mxu0 %v2803_v13 }
 0x1f7   : > { %2124 = vmatmul.mubr.f32.gmra.mrb[8].mxu1 %v574_v47 }
 0x1f8   : > { %2126 = vmatprep.mubr.f32.mxu1 %v584_v60 }
 0x1f9   : > { %2069 = vmatmul.mubr.f32.gmra.mrb[10].mxu0 %v2814_v20 }
 0x1fa   : > { %2071 = vmatprep.mubr.f32.mxu0 %v2825_v27 }
 0x1fb   : > { %2127 = vmatmul.mubr.f32.gmra.mrb[10].mxu1 %v594_v9 }
 0x1fc   : > { %2129 = vmatprep.mubr.f32.mxu1 %v604_v21 }
 0x1fd   : > { %2072 = vmatmul.mubr.f32.gmra.mrb[12].mxu0 %v2836_v36 }
 0x1fe   : > { %2074 = vmatprep.mubr.f32.mxu0 %v2847_v50 }
 0x1ff   : > { %2130 = vmatmul.mubr.f32.gmra.mrb[12].mxu1 %v614_v34 }
 0x200   : > { %2132 = vmatprep.mubr.f32.mxu1 %v624_v55 }
 0x201   : > { %2075 = vmatmul.mubr.f32.gmra.mrb[14].mxu0 %v2858_v61 }
 0x202   : > { %2077 = vmatprep.mubr.f32.mxu0 %v2869_v10 }
 0x203   : > { %2133 = vmatmul.mubr.f32.gmra.mrb[14].mxu1 %v634_v4 }
 0x204   : > { %2137 = vmatprep.mubr.f32.mxu1 %v2739_v38 }
 0x205   : > { %2078 = vmatmul.mubr.f32.gmra.mrb[16].mxu0 %v2875_v23 }
 0x206   : > { %2080 = vmatprep.mubr.f32.mxu0 %v2879_v37 }
 0x207   : > { %2138 = vmatmul.mubr.f32.vlgmr.msra.gmra.mrb[0].mxu1 %v2746_v43 }
 0x208   : > { %2162 = vmatpush3.msra.mxu1 %v2721_v28  ;;  %2140 = vmatprep.mubr.f32.mxu1 %v2757_v49 }
 0x209   : > { %2081 = vmatmul.mubr.f32.gmra.mrb[18].mxu0 %v2883_v59 }
 0x20b   : > { %2141 = vmatmul.mubr.f32.gmra.mrb[2].mxu1 %v2770_v57 }
 0x20c   : > { %2143 = vmatprep.mubr.f32.mxu1 %v2781_v63 }
 0x20f   : > { %2144 = vmatmul.mubr.f32.gmra.mrb[4].mxu1 %v2792_v6 }
 0x210   : > { %2146 = vmatprep.mubr.f32.mxu1 %v2803_v13 }
 0x213   : > { %2147 = vmatmul.mubr.f32.gmra.mrb[6].mxu1 %v2814_v20 }
 0x214   : > { %2149 = vmatprep.mubr.f32.mxu1 %v2825_v27 }
 0x217   : > { %2150 = vmatmul.mubr.f32.gmra.mrb[8].mxu1 %v2836_v36 }
 0x218   : > { %2152 = vmatprep.mubr.f32.mxu1 %v2847_v50 }
 0x21b   : > { %2153 = vmatmul.mubr.f32.gmra.mrb[10].mxu1 %v2858_v61 }
 0x21c   : > { %2155 = vmatprep.mubr.f32.mxu1 %v2869_v10 }
 0x21f   : > { %2156 = vmatmul.mubr.f32.gmra.mrb[12].mxu1 %v2875_v23 }
 0x220   : > { %2158 = vmatprep.mubr.f32.mxu1 %v2879_v37 }
 0x223   : > { %2159 = vmatmul.mubr.f32.gmra.mrb[14].mxu1 %v2883_v59 }
 0x224   : > { %2163 = vmatprep.mubr.f32.mxu1 %v2739_v38 }
 0x227   : > { %2164 = vmatmul.mubr.f32.vlgmr.msra.gmra.mrb[0].mxu1 %v2746_v43 }
 0x228   : > { %2166 = vmatprep.mubr.f32.mxu1 %v2757_v49 }
 0x22b   : > { %2167 = vmatmul.mubr.f32.gmra.mrb[2].mxu1 %v2770_v57 }
 0x22c   : > { %2169 = vmatprep.mubr.f32.mxu1 %v2781_v63 }
 0x22f   : > { %2170 = vmatmul.mubr.f32.gmra.mrb[4].mxu1 %v2792_v6 }
 0x230   : > { %2172 = vmatprep.mubr.f32.mxu1 %v2803_v13 }
 0x233   : > { %2173 = vmatmul.mubr.f32.gmra.mrb[6].mxu1 %v2814_v20 }
 0x234   : > { %2175 = vmatprep.mubr.f32.mxu1 %v2825_v27 }
 0x237   : > { %2176 = vmatmul.mubr.f32.gmra.mrb[8].mxu1 %v2836_v36 }
 0x238   : > { %2178 = vmatprep.mubr.f32.mxu1 %v2847_v50 }
 0x23b   : > { %2179 = vmatmul.mubr.f32.gmra.mrb[10].mxu1 %v2858_v61 }
 0x23c   : > { %2181 = vmatprep.mubr.f32.mxu1 %v2869_v10 }
 0x23f   : > { %2182 = vmatmul.mubr.f32.gmra.mrb[12].mxu1 %v2875_v23 }
 0x240   : > { %2184 = vmatprep.mubr.f32.mxu1 %v2879_v37 }
 0x243   : > { %2185 = vmatmul.mubr.f32.gmra.mrb[14].mxu1 %v2883_v59 }
 0x2c0   : > { %v2061_v28 = vpop.f32.mrb[4].mxu0 }
 0x2c1   : > { %v714_v38 = vpop.f32.mrb[5].mxu0 }
 0x2c4   : > { %v2064_v42 = vpop.f32.mrb[6].mxu0 }
 0x2c5   : > { %v726_v43 = vpop.f32.mrb[7].mxu0 }
 0x2c8   : > { %v2067_v44 = vpop.f32.mrb[8].mxu0 }
 0x2c9   : > { %v738_v48 = vpop.f32.mrb[9].mxu0 }
 0x2cc   : > { %v2070_v49 = vpop.f32.mrb[10].mxu0 }
 0x2cd   : > { %v750_v52 = vpop.f32.mrb[11].mxu0 }
 0x2d0   : > { %v2073_v56 = vpop.f32.mrb[12].mxu0 }
 0x2d1   : > { %v762_v57 = vpop.f32.mrb[13].mxu0 }
 0x2d4   : > { %v2076_v58 = vpop.f32.mrb[14].mxu0 }
 0x2d5   : > { %v774_v62 = vpop.f32.mrb[15].mxu0 }
 0x2d8   : > { %v2079_v63 = vpop.f32.mrb[16].mxu0 }
 0x2d9   : > { %v786_v1 = vpop.f32.mrb[17].mxu0 }
 0x2dc   : > { %v2082_v5 = vpop.f32.mrb[18].mxu0 }
 0x2dd   : > { %v798_v6 = vpop.f32.mrb[19].mxu0 }
 0x2fa   : > { %v2165_v13 = vpop.f32.mrb[0].mxu1 }
 0x2fb   : > { %v2258_v15 = vadd.f32 %v2165_v13, %v2061_v28  ;;  %v1413_v19 = vpop.f32.mrb[1].mxu1 }
 0x2fc   : > { %v2259_v20 = vadd.f32 %v1413_v19, %v714_v38 }
 0x2fd   : > { %v2968_v22 = vsel %vm1509_vm2, %v2258_v15, -1e+30 }
 0x2fe   : > { %v2168_v26 = vpop.f32.mrb[2].mxu1  ;;  %1528 = vmax.xlane.f32.xlu0 %v2968_v22  ;;  %v1510_v27 = vsel %vm1509_vm2, %v2259_v20, -1e+30 }
 0x2ff   : > { %v2260_v30 = vadd.f32 %v2168_v26, %v2064_v42  ;;  %v1425_v35 = vpop.f32.mrb[3].mxu1  ;;  %1526 = vmax.xlane.f32.xlu1 %v1510_v27 }
 0x300   : > { %v2261_v36 = vadd.f32 %v1425_v35, %v726_v43 }
 0x301   : > { %v1513_v40 = vsel %vm1509_vm2, %v2260_v30, -1e+30 }
 0x302   : > { %v2171_v47 = vpop.f32.mrb[4].mxu1  ;;  %1532 = vmax.xlane.f32.xlu0 %v1513_v40  ;;  %v1512_v61 = vsel %vm1509_vm2, %v2261_v36, -1e+30 }
 0x303   : > { %v2262_v50 = vadd.f32 %v2171_v47, %v2067_v44  ;;  %v1437_v53 = vpop.f32.mrb[5].mxu1 }
 0x304   : > { %v2263_v60 = vadd.f32 %v1437_v53, %v738_v48 }
 0x305   : > { %v1515_v18 = vsel %vm1509_vm2, %v2262_v50, -1e+30 }
 0x306   : > { %v2174_v9 = vpop.f32.mrb[6].mxu1  ;;  %1530 = vmax.xlane.f32.xlu0 %v1512_v61  ;;  %v1514_v29 = vsel %vm1509_vm2, %v2263_v60, -1e+30 }
 0x307   : > { %v2264_v10 = vadd.f32 %v2174_v9, %v2070_v49  ;;  %v1449_v16 = vpop.f32.mrb[7].mxu1 }
 0x308   : > { %v2265_v17 = vadd.f32 %v1449_v16, %v750_v52 }
 0x309   : > { %v1517_v41 = vsel %vm1509_vm2, %v2264_v10, -1e+30 }
 0x30a   : > { %v2177_v21 = vpop.f32.mrb[8].mxu1  ;;  %1536 = vmax.xlane.f32.xlu0 %v1515_v18  ;;  %v1516_v55 = vsel %vm1509_vm2, %v2265_v17, -1e+30 }
 0x30b   : > { %v2266_v23 = vadd.f32 %v2177_v21, %v2073_v56  ;;  %v1461_v24 = vpop.f32.mrb[9].mxu1 }
 0x30c   : > { %v2267_v25 = vadd.f32 %v1461_v24, %v762_v57 }
 0x30d   : > { %v1519_v4 = vsel %vm1509_vm2, %v2266_v23, -1e+30 }
 0x30e   : > { %v2180_v32 = vpop.f32.mrb[10].mxu1  ;;  %1534 = vmax.xlane.f32.xlu0 %v1514_v29  ;;  %v2989_v7 = vsel %vm1509_vm2, %v2267_v25, -1e+30 }
 0x30f   : > { %v2268_v33 = vadd.f32 %v2180_v32, %v2076_v58  ;;  %v1473_v34 = vpop.f32.mrb[11].mxu1 }
 0x310   : > { %v2269_v37 = vadd.f32 %v1473_v34, %v774_v62 }
 0x311   : > { %v2994_v11 = vsel %vm1509_vm2, %v2268_v33, -1e+30 }
 0x312   : > { %v2183_v45 = vpop.f32.mrb[12].mxu1  ;;  %1540 = vmax.xlane.f32.xlu0 %v1517_v41  ;;  %v2999_v14 = vsel %vm1509_vm2, %v2269_v37, -1e+30 }
 0x313   : > { %v2270_v46 = vadd.f32 %v2183_v45, %v2079_v63  ;;  %v1485_v51 = vpop.f32.mrb[13].mxu1 }
 0x314   : > { %v2271_v54 = vadd.f32 %v1485_v51, %v786_v1 }
 0x315   : > { %v3004_v28 = vsel %vm1509_vm2, %v2270_v46, -1e+30 }
 0x316   : > { %v2186_v59 = vpop.f32.mrb[14].mxu1  ;;  %1538 = vmax.xlane.f32.xlu0 %v1516_v55  ;;  %v3009_v38 = vsel %vm1509_vm2, %v2271_v54, -1e+30 }
 0x317   : > { %v2272_v0 = vadd.f32 %v2186_v59, %v2082_v5  ;;  %v1497_v2 = vpop.f32.mrb[15].mxu1 }
 0x318   : > { %v2273_v3 = vadd.f32 %v1497_v2, %v798_v6 }
 0x319   : > { %v3019_v43 = vsel %vm1509_vm2, %v2272_v0, -1e+30 }
 0x31a   : > { %1544 = vmax.xlane.f32.xlu0 %v1519_v4  ;;  %v3014_v42 = vsel %vm1509_vm2, %v2273_v3, -1e+30 }
 0x31e   : > { %1542 = vmax.xlane.f32.xlu0 %v2989_v7 }
 0x322   : > { %1548 = vmax.xlane.f32.xlu0 %v2994_v11 }
 0x326   : > { %1546 = vmax.xlane.f32.xlu0 %v2999_v14 }
 0x32a   : > { %1552 = vmax.xlane.f32.xlu0 %v3004_v28 }
 0x32e   : > { %1550 = vmax.xlane.f32.xlu0 %v3009_v38 }
 0x332   : > { %1554 = vmax.xlane.f32.xlu0 %v3014_v42 }
 0x336   : > { %1556 = vmax.xlane.f32.xlu0 %v3019_v43 }
 0x38b   : > { %v1529_v44 = vpop.xlane.xlu0 %1528 }
 0x38c   : > { %v1527_v48 = vpop.xlane.xlu1 %1526  ;;  %v1559_v49 = vsub.f32 %v2968_v22, %v1529_v44 }
 0x38d   : > { %v1558_v52 = vsub.f32 %v1510_v27, %v1527_v48 }
 0x38e   : > { %v1576_v62 = vmul.f32 1.442695, %v1559_v49 }
 0x38f   : > { %v1574_v56 = vmul.f32 1.442695, %v1558_v52  ;;  %v1533_v57 = vpop.xlane.xlu0 %1532  ;;  %v214_v52 = vld [vmem:[%s3164_s2 + $0x10] sm:$0xff] }
 0x390   : > { %v1561_v58 = vsub.f32 %v1513_v40, %v1533_v57 }
 0x391   : > { %2392 = vpow2.f32 %v1574_v56 }
 0x392   : > { %v1580_v63 = vmul.f32 1.442695, %v1561_v58 }
 0x393   : > { %v1531_v1 = vpop.xlane.xlu0 %1530 }
 0x394   : > { %2394 = vpow2.f32 %v1580_v63  ;;  %v1560_v5 = vsub.f32 %v1512_v61, %v1531_v1 }
 0x395   : > { %2396 = vpow2.f32 %v1576_v62 }
 0x396   : > { %v1578_v6 = vmul.f32 1.442695, %v1560_v5 }
 0x397   : > { %v1537_v8 = vpop.xlane.xlu0 %1536 }
 0x398   : > { %2398 = vpow2.f32 %v1578_v6  ;;  %v1563_v12 = vsub.f32 %v1515_v18, %v1537_v8 }
 0x39a   : > { %v1584_v13 = vmul.f32 1.442695, %v1563_v12 }
 0x39b   : > { %v3023_v15 = vpop.eup %2392  ;;  %v1535_v19 = vpop.xlane.xlu0 %1534 }
 0x39c   : > { %2400 = vpow2.f32 %v1584_v13  ;;  %v1562_v20 = vsub.f32 %v1514_v29, %v1535_v19  ;;  %1606 = vadd.xlane.f32.xlu0 %v3023_v15 }
 0x39e   : > { %v3026_v22 = vpop.eup %2394  ;;  %v1582_v26 = vmul.f32 1.442695, %v1562_v20 }
 0x39f   : > { %v3028_v27 = vpop.eup %2396  ;;  %1612 = vadd.xlane.f32.xlu1 %v3026_v22  ;;  %v1541_v30 = vpop.xlane.xlu0 %1540 }
 0x3a0   : > { %2402 = vpow2.f32 %v1582_v26  ;;  %v1565_v35 = vsub.f32 %v1517_v41, %v1541_v30  ;;  %1608 = vadd.xlane.f32.xlu0 %v3028_v27 }
 0x3a2   : > { %v3032_v36 = vpop.eup %2398  ;;  %v1588_v40 = vmul.f32 1.442695, %v1565_v35 }
 0x3a3   : > { %v1539_v47 = vpop.xlane.xlu0 %1538 }
 0x3a4   : > { %2404 = vpow2.f32 %v1588_v40  ;;  %v1564_v50 = vsub.f32 %v1516_v55, %v1539_v47  ;;  %1610 = vadd.xlane.f32.xlu0 %v3032_v36 }
 0x3a6   : > { %v3035_v53 = vpop.eup %2400  ;;  %v1586_v60 = vmul.f32 1.442695, %v1564_v50 }
 0x3a7   : > { %1616 = vadd.xlane.f32.xlu1 %v3035_v53  ;;  %v1545_v61 = vpop.xlane.xlu0 %1544 }
 0x3a8   : > { %2406 = vpow2.f32 %v1586_v60  ;;  %v1567_v9 = vsub.f32 %v1519_v4, %v1545_v61 }
 0x3aa   : > { %v3038_v10 = vpop.eup %2402  ;;  %v1592_v16 = vmul.f32 1.442695, %v1567_v9 }
 0x3ab   : > { %v1543_v17 = vpop.xlane.xlu0 %1542  ;;  %1614 = vadd.xlane.f32.xlu0 %v3038_v10 }
 0x3ac   : > { %2408 = vpow2.f32 %v1592_v16  ;;  %v1566_v18 = vsub.f32 %v2989_v7, %v1543_v17 }
 0x3ae   : > { %v3042_v21 = vpop.eup %2404  ;;  %v1590_v23 = vmul.f32 1.442695, %v1566_v18 }
 0x3af   : > { %1620 = vadd.xlane.f32.xlu1 %v3042_v21  ;;  %v1549_v24 = vpop.xlane.xlu0 %1548 }
 0x3b0   : > { %2410 = vpow2.f32 %v1590_v23  ;;  %v1569_v25 = vsub.f32 %v2994_v11, %v1549_v24 }
 0x3b2   : > { %v3046_v29 = vpop.eup %2406  ;;  %v1596_v32 = vmul.f32 1.442695, %v1569_v25 }
 0x3b3   : > { %v1547_v33 = vpop.xlane.xlu0 %1546  ;;  %1618 = vadd.xlane.f32.xlu0 %v3046_v29 }
 0x3b4   : > { %2412 = vpow2.f32 %v1596_v32  ;;  %v1568_v34 = vsub.f32 %v2999_v14, %v1547_v33 }
 0x3b6   : > { %v3050_v37 = vpop.eup %2408  ;;  %v1594_v41 = vmul.f32 1.442695, %v1568_v34 }
 0x3b7   : > { %1624 = vadd.xlane.f32.xlu1 %v3050_v37  ;;  %v1553_v45 = vpop.xlane.xlu0 %1552 }
 0x3b8   : > { %2414 = vpow2.f32 %v1594_v41  ;;  %v1571_v46 = vsub.f32 %v3004_v28, %v1553_v45 }
 0x3ba   : > { %v3054_v51 = vpop.eup %2410  ;;  %v1600_v54 = vmul.f32 1.442695, %v1571_v46 }
 0x3bb   : > { %v1551_v55 = vpop.xlane.xlu0 %1550  ;;  %1622 = vadd.xlane.f32.xlu0 %v3054_v51 }
 0x3bc   : > { %2416 = vpow2.f32 %v1600_v54  ;;  %v1570_v59 = vsub.f32 %v3009_v38, %v1551_v55 }
 0x3be   : > { %v3058_v0 = vpop.eup %2412  ;;  %v1598_v2 = vmul.f32 1.442695, %v1570_v59 }
 0x3bf   : > { %1628 = vadd.xlane.f32.xlu1 %v3058_v0  ;;  %v1555_v3 = vpop.xlane.xlu0 %1554 }
 0x3c0   : > { %2418 = vpow2.f32 %v1598_v2  ;;  %v1572_v4 = vsub.f32 %v3014_v42, %v1555_v3 }
 0x3c2   : > { %v3062_v7 = vpop.eup %2414  ;;  %v1602_v11 = vmul.f32 1.442695, %v1572_v4 }
 0x3c3   : > { %1626 = vadd.xlane.f32.xlu0 %v3062_v7  ;;  %v1557_v14 = vpop.xlane.xlu0 %1556 }
 0x3c4   : > { %2420 = vpow2.f32 %v1602_v11  ;;  %v1573_v28 = vsub.f32 %v3019_v43, %v1557_v14  ;;  %v215_v43 = vld [vmem:[%s3164_s2 + $0x18] sm:$0xff] }
 0x3c6   : > { %v3066_v44 = vpop.eup %2416  ;;  %v1604_v38 = vmul.f32 1.442695, %v1573_v28 }
 0x3c7   : > { %1632 = vadd.xlane.f32.xlu1 %v3066_v44 }
 0x3c8   : > { %2422 = vpow2.f32 %v1604_v38 }
 0x3ca   : > { %v3069_v48 = vpop.eup %2418 }
 0x3cb   : > { %1630 = vadd.xlane.f32.xlu0 %v3069_v48 }
 0x3ce   : > { %v3072_v42 = vpop.eup %2420 }
 0x3cf   : > { %1634 = vadd.xlane.f32.xlu0 %v3072_v42 }
 0x3d2   : > { %v3075_v49 = vpop.eup %2422 }
 0x3d3   : > { %1636 = vadd.xlane.f32.xlu1 %v3075_v49 }
 0x3e4   : > { %233 = vperm.xlu1 %2391, %v215_v43  }
 0x3e5   : > { %228 = vperm.xlu0 %2390, %v214_v52   ;;  %v1877_v52 = vld [vmem:[%s2693_s11 + $0x18] sm:$0xff] }
 0x429   : > { %v1607_v56 = vpop.xlane.xlu0 %1606 }
 0x42a   : > { %2424 = vrcp.f32 %v1607_v56  ;;  %v1881_v56 = vld [vmem:[%s2693_s11 + $0x28] sm:$0xff] }
 0x42c   : > { %v1613_v57 = vpop.xlane.xlu1 %1612 }
 0x42d   : > { %v1609_v58 = vpop.xlane.xlu0 %1608 }
 0x42e   : > { %2426 = vrcp.f32 %v1609_v58  ;;  %v1884_v58 = vld [vmem:[%s2693_s11 + $0x30] sm:$0xff] }
 0x42f   : > { %2428 = vrcp.f32 %v1613_v57  ;;  %v1885_v57 = vld [vmem:[%s2693_s11 + $0x38] sm:$0xff] }
 0x431   : > { %v1611_v62 = vpop.xlane.xlu0 %1610 }
 0x432   : > { %2430 = vrcp.f32 %v1611_v62 }
 0x434   : > { %v1617_v63 = vpop.xlane.xlu1 %1616  ;;  %v2425_v1 = vpop.eup %2424 }
 0x435   : > { %2432 = vrcp.f32 %v1617_v63  ;;  %v1654_v8 = vmul.f32 %v2425_v1, %v3023_v15  ;;  %v2456_v63 = vld [vmem:[%s2693_s11 + $0x8] sm:$0xff] }
 0x438   : > { %v2427_v5 = vpop.eup %2426  ;;  %v1615_v6 = vpop.xlane.xlu0 %1614 }
 0x439   : > { %2434 = vrcp.f32 %v1615_v6  ;;  %v1655_v12 = vmul.f32 %v2427_v5, %v3028_v27  ;;  %v2429_v13 = vpop.eup %2428 }
 0x43a   : > { %v1657_v35 = vmul.f32 %v2429_v13, %v3026_v22 }
 0x43b   : > { %v2226_v19 = vpack.c.bf16 %v1655_v12, %v1654_v8 }
 0x43c   : > { %v2431_v20 = vpop.eup %2430  ;;  %v1621_v26 = vpop.xlane.xlu1 %1620 }
 0x43d   : > { %2227 = vmatprep.subr.bf16.mxu0 %v2226_v19  ;;  %v1656_v30 = vmul.f32 %v2431_v20, %v3032_v36  ;;  %2436 = vrcp.f32 %v1621_v26 }
 0x43e   : > { %2229 = vmatpush3.bf16.xpose.msra.mxu0 %v2226_v19 }
 0x43f   : > { %v2230_v40 = vpack.c.bf16 %v1657_v35, %v1656_v30  ;;  %v2433_v50 = vpop.eup %2432 }
 0x440   : > { %v1619_v47 = vpop.xlane.xlu0 %1618  ;;  %v1659_v61 = vmul.f32 %v2433_v50, %v3035_v53 }
 0x441   : > { %2438 = vrcp.f32 %v1619_v47  ;;  %2231 = vmatprep.subr.bf16.mxu0 %v2230_v40 }
 0x443   : > { %v2435_v60 = vpop.eup %2434 }
 0x444   : > { %v1625_v15 = vpop.xlane.xlu1 %1624  ;;  %v1658_v27 = vmul.f32 %v2435_v60, %v3038_v10 }
 0x445   : > { %2440 = vrcp.f32 %v1625_v15 }
 0x446   : > { %2233 = vmatpush3.bf16.xpose.msra.mxu0 %v2230_v40  ;;  %v2234_v9 = vpack.c.bf16 %v1659_v61, %v1658_v27 }
 0x447   : > { %v2437_v16 = vpop.eup %2436 }
 0x448   : > { %2235 = vmatprep.subr.bf16.mxu0 %v2234_v9  ;;  %v1623_v36 = vpop.xlane.xlu0 %1622  ;;  %v1661_v23 = vmul.f32 %v2437_v16, %v3042_v21 }
 0x449   : > { %2442 = vrcp.f32 %v1623_v36 }
 0x44b   : > { %v2439_v22 = vpop.eup %2438 }
 0x44c   : > { %v1629_v17 = vpop.xlane.xlu1 %1628  ;;  %v1660_v18 = vmul.f32 %v2439_v22, %v3046_v29 }
 0x44d   : > { %2444 = vrcp.f32 %v1629_v17 }
 0x44e   : > { %2237 = vmatpush3.bf16.xpose.msra.mxu0 %v2234_v9  ;;  %v2238_v24 = vpack.c.bf16 %v1661_v23, %v1660_v18 }
 0x44f   : > { %v2441_v25 = vpop.eup %2440 }
 0x450   : > { %2239 = vmatprep.subr.bf16.mxu0 %v2238_v24  ;;  %v1627_v10 = vpop.xlane.xlu0 %1626  ;;  %v1663_v34 = vmul.f32 %v2441_v25, %v3050_v37 }
 0x451   : > { %2446 = vrcp.f32 %v1627_v10 }
 0x453   : > { %v2443_v53 = vpop.eup %2442 }
 0x454   : > { %v1633_v32 = vpop.xlane.xlu1 %1632  ;;  %v1662_v33 = vmul.f32 %v2443_v53, %v3054_v51 }
 0x455   : > { %2448 = vrcp.f32 %v1633_v32 }
 0x456   : > { %2241 = vmatpush3.bf16.xpose.msra.mxu0 %v2238_v24  ;;  %v2242_v41 = vpack.c.bf16 %v1663_v34, %v1662_v33 }
 0x457   : > { %v2445_v45 = vpop.eup %2444 }
 0x458   : > { %2243 = vmatprep.subr.bf16.mxu0 %v2242_v41  ;;  %v1631_v29 = vpop.xlane.xlu0 %1630  ;;  %v1665_v55 = vmul.f32 %v2445_v45, %v3058_v0 }
 0x459   : > { %2450 = vrcp.f32 %v1631_v29 }
 0x45b   : > { %v2447_v21 = vpop.eup %2446 }
 0x45c   : > { %v1635_v46 = vpop.xlane.xlu0 %1634  ;;  %v1664_v54 = vmul.f32 %v2447_v21, %v3062_v7 }
 0x45d   : > { %2452 = vrcp.f32 %v1635_v46 }
 0x45e   : > { %2245 = vmatpush3.bf16.xpose.msra.mxu0 %v2242_v41  ;;  %v2246_v59 = vpack.c.bf16 %v1665_v55, %v1664_v54 }
 0x45f   : > { %v2449_v51 = vpop.eup %2448 }
 0x460   : > { %v1637_v2 = vpop.xlane.xlu1 %1636  ;;  %2247 = vmatprep.subr.bf16.mxu0 %v2246_v59  ;;  %v1667_v11 = vmul.f32 %v2449_v51, %v3066_v44 }
 0x461   : > { %2454 = vrcp.f32 %v1637_v2 }
 0x463   : > { %v2451_v37 = vpop.eup %2450 }
 0x464   : > { %v229_v3 = vpop.permute.xlu0 %228  ;;  %v1666_v4 = vmul.f32 %v2451_v37, %v3069_v48  ;;  %v234_v44 = vpop.permute.xlu1 %233 }
 0x465   : > { %v326_v14 = vadd.f32 %v2924_v39, %v229_v3  ;;  %v331_v43 = vadd.f32 %v2921_v31, %v234_v44  ;;  %v2457_v31 = vld [vmem:[%s2693_s11] sm:$0xff] }
 0x466   : > { %2249 = vmatpush3.bf16.xpose.msra.mxu0 %v2246_v59  ;;  %v2250_v7 = vpack.c.bf16 %v1667_v11, %v1666_v4 }
 0x467   : > { %2219 = vmatprep.mubr.f32.mxu0 %v326_v14  ;;  %v2453_v0 = vpop.eup %2452 }
 0x468   : > { %2251 = vmatprep.subr.bf16.mxu0 %v2250_v7  ;;  %v1668_v38 = vmul.f32 %v2453_v0, %v3072_v42  ;;  %v1876_v42 = vld [vmem:[%s2693_s11 + $0x10] sm:$0xff] }
 0x46b   : > { %v2455_v28 = vpop.eup %2454 }
 0x46c   : > { %v1669_v48 = vmul.f32 %v2455_v28, %v3075_v49  ;;  %v1880_v49 = vld [vmem:[%s2693_s11 + $0x20] sm:$0xff]  ;;  %s2560_s11 = smov [#allocation5]  }
 0x46d   : > { %s2492_s20 = sshll.u32 %s2560_s11, 4  ;;  %s2493_s20 = int_to_ptr.vmem [resolvable:$false] %s2492_s20 }
 0x46e   : > { %2253 = vmatpush3.bf16.xpose.msra.mxu0 %v2250_v7  ;;  %v2254_v39 = vpack.c.bf16 %v1669_v48, %v1668_v38  ;;  %s2494_s22 = scalar_lea.vmem %s2493_s20, 2048  ;;  %p2495_p8 = scmp.lt.s32.totalorder %s3117_s7, %s2493_s20 }
 0x46f   : > { %p2496_p10 = scmp.lt.s32.totalorder %s2494_s22, %s2488_s9 }
 0x470   : > { %2255 = vmatprep.subr.bf16.mxu0 %v2254_v39 }
 0x471   : > { %p2497_p0 = por %p2496_p10, %p2495_p8 }
 0x473   : > { %p2498_p2 = pnand %p2497_p0, %p2491_p13 }
 0x476   : > { %2257 = vmatpush3.bf16.xpose.msra.mxu0 %v2254_v39 }
 0x47d   : > { %2220 = vmatmul.mubr.f32.vlgmr.msra.gmra.mrb[20].mxu0 %v331_v43 }
 0x550   : > { %v2221_v62 = vpop.f32.mrb[20].mxu0 }
 0x551   : > { %v1746_v1 = vadd.f32 %v2456_v63, %v2221_v62  ;;  %v1752_v5 = vadd.f32 %v2221_v62, %v1877_v52  ;;  %v1759_v6 = vadd.f32 %v2221_v62, %v1881_v56  ;;  %v1766_v8 = vadd.f32 %v2221_v62, %v1885_v57  ;;  %v1736_v12 = vpop.f32.mrb[21].mxu0 }
 0x552   : > { %v1745_v13 = vadd.f32 %v2457_v31, %v1736_v12  ;;  %v1751_v19 = vadd.f32 %v1876_v42, %v1736_v12  ;;  %v1758_v20 = vadd.f32 %v1880_v49, %v1736_v12  ;;  %v1765_v26 = vadd.f32 %v1884_v58, %v1736_v12 }
 0x553   : > { %1748 = vst [vmem:[%s188_s6 + $0x8] sm:$0xff] %v1746_v1  ;;  %1879 = vst [vmem:[%s188_s6 + $0x18] sm:$0xff] %v1752_v5 }
 0x554   : > { %1883 = vst [vmem:[%s188_s6 + $0x28] sm:$0xff] %v1759_v6  ;;  %1887 = vst [vmem:[%s188_s6 + $0x38] sm:$0xff] %v1766_v8 }
 0x555   : > { %1747 = vst [vmem:[%s188_s6] sm:$0xff] %v1745_v13  ;;  %1878 = vst [vmem:[%s188_s6 + $0x10] sm:$0xff] %v1751_v19 }
 0x556   : > { %1882 = vst [vmem:[%s188_s6 + $0x20] sm:$0xff] %v1758_v20  ;;  %1886 = vst [vmem:[%s188_s6 + $0x30] sm:$0xff] %v1765_v26 }
 0x557   : > { %2501 = shalt.err (!%p2498_p2)
}
 0x558   : > { %s2502_s26 = scalar_lea.hbm %s3115_s19, 1024  ;;  %s2506_s29 = scalar_lea.hbm %s3165_s3, 2048 }
 0x559   : > { %p2503_p4 = scmp.ne.s32.totalorder %s3115_s19, %s2502_s26  ;;  %p2507_p9 = scmp.lt.u32.totalorder %s3115_s19, %s3165_s3 }
 0x55a   : > { %p2508_p1 = scmp.lt.u32.totalorder %s2506_s29, %s2502_s26  ;;  %p2510_p6 = scmp.lt.u32.totalorder %s2502_s26, %s3115_s19 }
 0x55b   : > { %p2504_p5 = pnand %p2503_p4, %p3172_p11 }
 0x55c   : > { %p2509_p3 = por %p2508_p1, %p2507_p9 }
 0x55d   : > { %p2505_p7 = pneg %p2504_p5 }
 0x55e   : > { %p2511_p12 = por %p2510_p6, %p2509_p3 }
 0x560   : > { %p2512_p13 = pnand %p2511_p12, %p2505_p7 }
 0x562   : > { %2515 = shalt.err (!%p2512_p13)
}
 0x563   : > { %s2561_s23 = smov 128   ;;  %s2562_s4 = smov 8  }
 0x564   : > { %2340 = dma.vmem_to_hbm [thread:$0]  (%p3172_p11), %s3117_s7, 1024, %s3115_s19, %s1771_s16, %s2561_s23, %s2561_s23, %s2562_s4  }
 0x565 PF: > { %s1799_s6 = sand.u32 1, %s2542_s12   ;;  %p3173_p8 = scmp.ne.s32.totalorder %s3170_s25, 0 }
 0x566   : > { %p3174_p10 = scmp.ge.s32.totalorder %s2554_s15, 2  ;;  %s1800_s8 = scalar_lea.sflag [#allocation4], %s1799_s6 }
 0x568   : > { %p2347_p0 = pnand %p3174_p10, %p3173_p8 }
 0x56a   : > { %2537 = dma.done.wait (!%p2347_p0), %s1800_s8, 1024  }
 0x56b   : > { %2539 = vsyncadd (!%p2347_p0), %s1800_s8, 4294966272  ;;  %p16_p2 = scmp.ge.s32.totalorder %s2608_s18, 4   ;;  %s3175_s12 = smov %s2546_s13 }
 0x56c   : > { %s3176_s13 = smov %s2550_s14  ;;  %s3177_s14 = smov %s2620_s21 }
 0x56d   : > { %s3178_s15 = smov %s2608_s18  ;;  %18 = sbr.rel (!%p16_p2) target bundleno = 5 (0x5), region = 83 }
 0x574   :  { %1805 = vsyncpa [#allocation3], 1 }
 0x575   :  { %1807 = vsyncpa [#allocation3 + $0x1], 1 }
 0x576   :  { %1808 = vsyncpa [#allocation4], 1 }
 0x577   :  { %1810 = vsyncpa [#allocation4 + $0x1], 1 }

</bundles_post_ra>
